<compile_context>
chip_gen: v7x
topology: tpu7x:2x2x1
jax: 0.10.0
libtpu: 0.0.40
codegen_flags: <defaults>
</compile_context>

<pallas_src>
import functools
import math

import jax
import jax.numpy as jnp
from jax import lax
from jax.experimental import pallas as pl
from jax.experimental.pallas import tpu as pltpu

_EPS = 1e-5


def _ema1d_kernel(x_ref, p_ref, w_ref, o_ref, *, nb, t):
    """One grid step: nb slabs of shape (cpg, t), flattened to (cpg, nb*t)."""
    gx = x_ref[0]                                   # (cpg, L) f32, L = nb*t
    cpg, L = gx.shape

    # ---- segment matrices (slab <-> flattened lane) from iota (no div/mod) ----
    li = lax.broadcasted_iota(jnp.int32, (L, nb), 0)
    ni = lax.broadcasted_iota(jnp.int32, (L, nb), 1)
    d = li - ni * t
    pm = jnp.where((d >= 0) & (d < t),
                   jnp.float32(1.0 / t), jnp.float32(0.0))      # (L, nb) mean-pool
    lj = lax.broadcasted_iota(jnp.int32, (nb, L), 1)
    nj = lax.broadcasted_iota(jnp.int32, (nb, L), 0)
    dj = lj - nj * t
    em = jnp.where((dj >= 0) & (dj < t),
                   jnp.float32(1.0), jnp.float32(0.0))          # (nb, L) expand

    # ---- packed parameters: [gamma_pat | beta_pat | b1 | b3] ----
    gamma_pat = p_ref[:, 0:nb]                      # (cpg, nb)
    beta_pat = p_ref[:, nb:2 * nb]                  # (cpg, nb)
    b1 = p_ref[:, 2 * nb:2 * nb + 1]                # (cpg, 1)
    b3 = p_ref[:, 2 * nb + 1:2 * nb + 2]            # (cpg, 1)

    # ---- GroupNorm stats per slab (pool over t on the MXU, tiny channel reduce) ----
    cm = jnp.dot(jnp.concatenate([gx, gx * gx], axis=0), pm,
                 preferred_element_type=jnp.float32)            # (2cpg, nb)
    mean_n = jnp.mean(cm[0:cpg], axis=0, keepdims=True)         # (1, nb)
    ex2_n = jnp.mean(cm[cpg:2 * cpg], axis=0, keepdims=True)
    var_n = jnp.maximum(ex2_n - mean_n * mean_n, 0.0)           # biased variance
    rstd_n = lax.rsqrt(var_n + _EPS)

    # fold mean/rstd into a per-(channel, slab) affine, expand once via the MXU
    a_cn = gamma_pat * rstd_n                                   # (cpg, nb)
    c_cn = beta_pat - mean_n * a_cn
    starts = (lax.broadcasted_iota(jnp.int32, (1, nb), 1) * t).astype(jnp.float32)
    expd = jnp.dot(jnp.concatenate([a_cn, c_cn, starts], axis=0), em,
                   preferred_element_type=jnp.float32)          # (2cpg+1, L)
    a_l = expd[0:cpg]
    c_l = expd[cpg:2 * cpg]
    start_l = expd[2 * cpg:2 * cpg + 1]                         # slab-start column index

    # ---- conv1x1 + conv3x3 (padding=1): rolled taps, one bf16 MXU matmul ----
    colf = lax.broadcasted_iota(jnp.int32, (1, L), 1).astype(jnp.float32)
    t_col = colf - start_l                                      # time index per column
    not_first = jnp.where(t_col > 0.5, 1.0, 0.0)                # zero at t == 0
    not_last = jnp.where(t_col < (t - 1) - 0.5, 1.0, 0.0)       # zero at t == T-1
    gx_prev = pltpu.roll(gx, shift=1, axis=1) * not_first       # x[:, t-1], 0 at t=0
    gx_next = pltpu.roll(gx, shift=L - 1, axis=1) * not_last    # x[:, t+1], 0 at t=T-1
    g3 = jnp.concatenate([gx_prev, gx, gx_next], axis=0).astype(jnp.bfloat16)
    conv = jnp.dot(w_ref[...], g3, preferred_element_type=jnp.float32)  # (2cpg, L)
    t_att = conv[0:cpg] + b1                                    # conv1x1 output
    x2 = conv[cpg:2 * cpg] + b3                                 # conv3x3 output

    gn = gx * a_l + c_l                                         # GroupNorm (affine folded)
    x1 = gn * jax.nn.sigmoid(t_att)

    # ---- adaptive-avg-pool + channel softmax per slab, cross-weighted sum ----
    m12 = jnp.dot(jnp.concatenate([x1, x2], axis=0), pm,
                  preferred_element_type=jnp.float32)           # (2cpg, nb)
    m1 = m12[0:cpg]
    m2 = m12[cpg:2 * cpg]
    e1 = jnp.exp(m1 - jnp.max(m1, axis=0, keepdims=True))
    e2 = jnp.exp(m2 - jnp.max(m2, axis=0, keepdims=True))
    s1 = e1 * pl.reciprocal(jnp.sum(e1, axis=0, keepdims=True), approx=True)
    s2 = e2 * pl.reciprocal(jnp.sum(e2, axis=0, keepdims=True), approx=True)
    s_l = jnp.dot(jnp.concatenate([s1, s2], axis=0), em,
                  preferred_element_type=jnp.float32)           # (2cpg, L)
    combo = s_l[0:cpg] * x2 + s_l[cpg:2 * cpg] * x1             # (cpg, L)
    wvec = jnp.dot(jnp.ones((1, cpg), jnp.float32), combo,
                   preferred_element_type=jnp.float32)          # (1, L) channel sum on MXU

    o_ref[0] = (gx * jax.nn.sigmoid(wvec)).astype(o_ref.dtype)


def _pick_batches_per_block(b, groups, cpg, t, max_block_bytes=1 << 20):
    """Batch rows packed per grid step (NB = groups*kb slabs).

    Largest kb dividing b such that the f32 x-block fits a conservative budget
    (sized against v7x's smaller VMEM) while keeping >= 2 grid steps when
    possible so ("parallel",) can split the grid across v7x's two TensorCores.
    """
    best = 1
    for kb in range(1, b + 1):
        if b % kb:
            continue
        if groups * kb * t * cpg * 4 > max_block_bytes:
            break
        if (b // kb) >= 2 or b == 1:
            best = kb
    return best


def ema1d_pallas(x, gamma, beta, w1, b1, w3, b3, groups):
    b, c, t = x.shape
    cpg = c // groups
    bg = b * groups

    kb = _pick_batches_per_block(b, groups, cpg, t)
    nb = groups * kb                    # slabs per grid step (multiple of groups)
    n_blocks = bg // nb
    L = nb * t                          # lane-dense flattened (slab, time) axis

    # lane-dense layout: block i holds slabs [i*nb, (i+1)*nb) as (cpg, nb*t)
    gxf = (x.reshape(n_blocks, nb, cpg, t)
            .transpose(0, 2, 1, 3)
            .reshape(n_blocks, cpg, L))

    # packed params: slab j in a block has group j % groups (nb % groups == 0)
    rep = nb // groups
    gamma_pat = jnp.tile(gamma.reshape(groups, cpg).T, (1, rep))    # (cpg, nb)
    beta_pat = jnp.tile(beta.reshape(groups, cpg).T, (1, rep))      # (cpg, nb)
    params = jnp.concatenate(
        [gamma_pat, beta_pat, b1.reshape(cpg, 1), b3.reshape(cpg, 1)],
        axis=1).astype(jnp.float32)                                 # (cpg, 2*nb+2)

    # conv1x1 + conv3x3 taps stacked into one bf16 weight: rows [0:cpg] -> conv1x1
    # (centre tap only), rows [cpg:2cpg] -> conv3x3 taps [t-1, t, t+1]
    zeros = jnp.zeros((cpg, cpg), jnp.float32)
    w_top = jnp.concatenate([zeros, w1, zeros], axis=1)
    w_bot = jnp.concatenate([w3[:, :, 0], w3[:, :, 1], w3[:, :, 2]], axis=1)
    big_w = jnp.concatenate([w_top, w_bot], axis=0).astype(jnp.bfloat16)

    kernel = functools.partial(_ema1d_kernel, nb=nb, t=t)
    out = pl.pallas_call(
        kernel,
        out_shape=jax.ShapeDtypeStruct((n_blocks, cpg, L), x.dtype),
        grid_spec=pltpu.PrefetchScalarGridSpec(
            num_scalar_prefetch=0,
            grid=(n_blocks,),
            in_specs=[
                pl.BlockSpec((1, cpg, L), lambda i: (i, 0, 0)),       # x slabs
                pl.BlockSpec((cpg, 2 * nb + 2), lambda i: (0, 0)),    # packed params
                pl.BlockSpec((2 * cpg, 3 * cpg), lambda i: (0, 0)),   # stacked conv weights
            ],
            out_specs=pl.BlockSpec((1, cpg, L), lambda i: (i, 0, 0)),
        ),
        compiler_params=pltpu.CompilerParams(
            dimension_semantics=("parallel",),
            vmem_limit_bytes=32 * 1024 * 1024,
        ),
    )(gxf, params, big_w)

    return (out.reshape(n_blocks, cpg, nb, t)
               .transpose(0, 2, 1, 3)
               .reshape(b, c, t))


def ema1d_ref(x, gamma, beta, w1, b1, w3, b3, groups):
    """Pure-JAX f32 reference mirroring the PyTorch forward."""
    b, c, t = x.shape
    cpg = c // groups
    gx = x.reshape(b * groups, cpg, t)
    # GroupNorm (biased variance)
    xr = x.reshape(b, groups, cpg * t)
    mean = xr.mean(-1, keepdims=True)
    var = ((xr - mean) ** 2).mean(-1, keepdims=True)
    gn = ((xr - mean) / jnp.sqrt(var + _EPS)).reshape(b, c, t)
    gn = gn * gamma[None, :, None] + beta[None, :, None]
    gn = gn.reshape(b * groups, cpg, t)
    # conv1x1
    t_att = jnp.einsum('oc,nct->not', w1, gx) + b1[None, :, None]
    x1 = gn * jax.nn.sigmoid(t_att)
    # conv3x3, padding=1
    gxp = jnp.pad(gx, ((0, 0), (0, 0), (1, 1)))
    x2 = (jnp.einsum('oc,nct->not', w3[:, :, 0], gxp[:, :, 0:t])
          + jnp.einsum('oc,nct->not', w3[:, :, 1], gxp[:, :, 1:t + 1])
          + jnp.einsum('oc,nct->not', w3[:, :, 2], gxp[:, :, 2:t + 2])
          + b3[None, :, None])
    s1 = jax.nn.softmax(x1.mean(-1), axis=-1)
    s2 = jax.nn.softmax(x2.mean(-1), axis=-1)
    w = jnp.einsum('nc,nct->nt', s1, x2) + jnp.einsum('nc,nct->nt', s2, x1)
    out = gx * jax.nn.sigmoid(w)[:, None, :]
    return out.reshape(b, c, t)


if __name__ == "__main__":
    B, C, T = 2, 32, 16
    factor = 8
    groups = min(factor, C)
    while C % groups != 0:
        groups -= 1
    cpg = C // groups

    key = jax.random.PRNGKey(0)
    ks = jax.random.split(key, 7)
    x = jax.random.normal(ks[0], (B, C, T), jnp.float32)
    gamma = 1.0 + 0.1 * jax.random.normal(ks[1], (C,), jnp.float32)
    beta = 0.1 * jax.random.normal(ks[2], (C,), jnp.float32)
    w1 = jax.random.normal(ks[3], (cpg, cpg), jnp.float32) / math.sqrt(cpg)
    b1 = 0.1 * jax.random.normal(ks[4], (cpg,), jnp.float32)
    w3 = jax.random.normal(ks[5], (cpg, cpg, 3), jnp.float32) / math.sqrt(3 * cpg)
    b3 = 0.1 * jax.random.normal(ks[6], (cpg,), jnp.float32)

    out = ema1d_pallas(x, gamma, beta, w1, b1, w3, b3, groups)
    out = jax.block_until_ready(out)

    ref = ema1d_ref(x, gamma, beta, w1, b1, w3, b3, groups)
    assert out.shape == (B, C, T)
    # bf16 MXU operands + approx-reciprocal softmax denominators -> relaxed
    # tolerance vs. the pure-f32 reference.
    assert jnp.allclose(out, ref, atol=5e-2, rtol=5e-2), "mismatch vs pure-JAX reference"
    print("KERNEL_OK")
</pallas_src>

<mosaic_0001>
module attributes {stable_mosaic.version = 11 : i64} {
  func.func @_ema1d_kernel(%arg0: i32, %arg1: memref<1x4x128xf32, #tpu.memory_space<vmem>>, %arg2: memref<4x18xf32, #tpu.memory_space<vmem>>, %arg3: memref<8x12xbf16, #tpu.memory_space<vmem>>, %arg4: memref<1x4x128xf32, #tpu.memory_space<vmem>>) attributes {dimension_semantics = [#tpu.dimension_semantics<parallel>], iteration_bounds = array<i64: 2>, scalar_prefetch = 0 : i64, scratch_operands = 0 : i64, tpu.core_type = #tpu.core_type<tc>, window_params = [{transform_indices = @transform_0, window_bounds = array<i64: 1, 4, 128>}, {pipeline_mode = #tpu.pipeline_mode<synchronous>, transform_indices = @transform_1, window_bounds = array<i64: 4, 18>}, {pipeline_mode = #tpu.pipeline_mode<synchronous>, transform_indices = @transform_2, window_bounds = array<i64: 8, 12>}, {transform_indices = @transform_3, window_bounds = array<i64: 1, 4, 128>}]} {
    %c0 = arith.constant 0 : index
    %c0_0 = arith.constant 0 : index
    %c0_1 = arith.constant 0 : index
    %0 = vector.load %arg1[%c0, %c0_0, %c0_1] : memref<1x4x128xf32, #tpu.memory_space<vmem>>, vector<1x4x128xf32>
    %1 = vector.shape_cast %0 : vector<1x4x128xf32> to vector<4x128xf32>
    %2 = tpu.iota {dimensions = array<i32: 0>} : vector<128x8xi32>
    %3 = tpu.iota {dimensions = array<i32: 1>} : vector<128x8xi32>
    %c16_i32 = arith.constant 16 : i32
    %4 = vector.broadcast %c16_i32 : i32 to vector<128x8xi32>
    %5 = arith.muli %3, %4 : vector<128x8xi32>
    %6 = arith.subi %2, %5 : vector<128x8xi32>
    %c0_i32 = arith.constant 0 : i32
    %7 = vector.broadcast %c0_i32 : i32 to vector<128x8xi32>
    %8 = arith.cmpi sge, %6, %7 : vector<128x8xi32>
    %c16_i32_2 = arith.constant 16 : i32
    %9 = vector.broadcast %c16_i32_2 : i32 to vector<128x8xi32>
    %10 = arith.cmpi slt, %6, %9 : vector<128x8xi32>
    %11 = arith.andi %8, %10 : vector<128x8xi1>
    %cst = arith.constant 6.250000e-02 : f32
    %cst_3 = arith.constant 0.000000e+00 : f32
    %12 = vector.broadcast %cst : f32 to vector<128x8xf32>
    %13 = vector.broadcast %cst_3 : f32 to vector<128x8xf32>
    %14 = arith.select %11, %12, %13 : vector<128x8xi1>, vector<128x8xf32>
    %15 = tpu.iota {dimensions = array<i32: 1>} : vector<8x128xi32>
    %16 = tpu.iota {dimensions = array<i32: 0>} : vector<8x128xi32>
    %c16_i32_4 = arith.constant 16 : i32
    %17 = vector.broadcast %c16_i32_4 : i32 to vector<8x128xi32>
    %18 = arith.muli %16, %17 : vector<8x128xi32>
    %19 = arith.subi %15, %18 : vector<8x128xi32>
    %c0_i32_5 = arith.constant 0 : i32
    %20 = vector.broadcast %c0_i32_5 : i32 to vector<8x128xi32>
    %21 = arith.cmpi sge, %19, %20 : vector<8x128xi32>
    %c16_i32_6 = arith.constant 16 : i32
    %22 = vector.broadcast %c16_i32_6 : i32 to vector<8x128xi32>
    %23 = arith.cmpi slt, %19, %22 : vector<8x128xi32>
    %24 = arith.andi %21, %23 : vector<8x128xi1>
    %cst_7 = arith.constant 1.000000e+00 : f32
    %cst_8 = arith.constant 0.000000e+00 : f32
    %25 = vector.broadcast %cst_7 : f32 to vector<8x128xf32>
    %26 = vector.broadcast %cst_8 : f32 to vector<8x128xf32>
    %27 = arith.select %24, %25, %26 : vector<8x128xi1>, vector<8x128xf32>
    %c0_9 = arith.constant 0 : index
    %c0_10 = arith.constant 0 : index
    %28 = vector.load %arg2[%c0_9, %c0_10] : memref<4x18xf32, #tpu.memory_space<vmem>>, vector<4x8xf32>
    %c0_11 = arith.constant 0 : index
    %c8 = arith.constant 8 : index
    %29 = vector.load %arg2[%c0_11, %c8] : memref<4x18xf32, #tpu.memory_space<vmem>>, vector<4x8xf32>
    %c0_12 = arith.constant 0 : index
    %c16 = arith.constant 16 : index
    %30 = vector.load %arg2[%c0_12, %c16] : memref<4x18xf32, #tpu.memory_space<vmem>>, vector<4x1xf32>
    %c0_13 = arith.constant 0 : index
    %c17 = arith.constant 17 : index
    %31 = vector.load %arg2[%c0_13, %c17] : memref<4x18xf32, #tpu.memory_space<vmem>>, vector<4x1xf32>
    %32 = arith.mulf %1, %1 : vector<4x128xf32>
    %33 = tpu.concatenate %1, %32 in 0 : vector<4x128xf32>, vector<4x128xf32> -> vector<8x128xf32>
    %cst_14 = arith.constant dense<0.000000e+00> : vector<8x8xf32>
    %34 = tpu.matmul %33, %14, %cst_14 {dimension_numbers = #tpu.dot_dimension_numbers<[1], [0], [0], [1], [0, 0, 1, 1], [], []>} : vector<8x128xf32>, vector<128x8xf32>, vector<8x8xf32> -> vector<8x8xf32>
    %35 = vector.extract_strided_slice %34 {offsets = [0, 0], sizes = [4, 8], strides = [1, 1]} : vector<8x8xf32> to vector<4x8xf32>
    %cst_15 = arith.constant dense<0.000000e+00> : vector<8xf32>
    %36 = vector.multi_reduction <add>, %35, %cst_15 [0] : vector<4x8xf32> to vector<8xf32>
    %37 = vector.shape_cast %36 : vector<8xf32> to vector<1x8xf32>
    %cst_16 = arith.constant 4.000000e+00 : f32
    %38 = vector.broadcast %cst_16 : f32 to vector<1x8xf32>
    %39 = arith.divf %37, %38 : vector<1x8xf32>
    %40 = vector.extract_strided_slice %34 {offsets = [4, 0], sizes = [4, 8], strides = [1, 1]} : vector<8x8xf32> to vector<4x8xf32>
    %cst_17 = arith.constant dense<0.000000e+00> : vector<8xf32>
    %41 = vector.multi_reduction <add>, %40, %cst_17 [0] : vector<4x8xf32> to vector<8xf32>
    %42 = vector.shape_cast %41 : vector<8xf32> to vector<1x8xf32>
    %cst_18 = arith.constant 4.000000e+00 : f32
    %43 = vector.broadcast %cst_18 : f32 to vector<1x8xf32>
    %44 = arith.divf %42, %43 : vector<1x8xf32>
    %45 = arith.mulf %39, %39 : vector<1x8xf32>
    %46 = arith.subf %44, %45 : vector<1x8xf32>
    %cst_19 = arith.constant 0.000000e+00 : f32
    %47 = vector.broadcast %cst_19 : f32 to vector<1x8xf32>
    %48 = arith.maximumf %46, %47 : vector<1x8xf32>
    %cst_20 = arith.constant 9.99999974E-6 : f32
    %49 = vector.broadcast %cst_20 : f32 to vector<1x8xf32>
    %50 = arith.addf %48, %49 : vector<1x8xf32>
    %51 = math.rsqrt %50 : vector<1x8xf32>
    %52 = vector.broadcast %51 : vector<1x8xf32> to vector<4x8xf32>
    %53 = arith.mulf %28, %52 : vector<4x8xf32>
    %54 = vector.broadcast %39 : vector<1x8xf32> to vector<4x8xf32>
    %55 = arith.mulf %54, %53 : vector<4x8xf32>
    %56 = arith.subf %29, %55 : vector<4x8xf32>
    %57 = tpu.iota {dimensions = array<i32: 1>} : vector<1x8xi32>
    %c16_i32_21 = arith.constant 16 : i32
    %58 = vector.broadcast %c16_i32_21 : i32 to vector<1x8xi32>
    %59 = arith.muli %57, %58 : vector<1x8xi32>
    %60 = arith.sitofp %59 : vector<1x8xi32> to vector<1x8xf32>
    %61 = tpu.concatenate %53, %56, %60 in 0 : vector<4x8xf32>, vector<4x8xf32>, vector<1x8xf32> -> vector<9x8xf32>
    %cst_22 = arith.constant dense<0.000000e+00> : vector<9x128xf32>
    %62 = tpu.matmul %61, %27, %cst_22 {dimension_numbers = #tpu.dot_dimension_numbers<[1], [0], [0], [1], [0, 0, 1, 1], [], []>} : vector<9x8xf32>, vector<8x128xf32>, vector<9x128xf32> -> vector<9x128xf32>
    %63 = vector.extract_strided_slice %62 {offsets = [0, 0], sizes = [4, 128], strides = [1, 1]} : vector<9x128xf32> to vector<4x128xf32>
    %64 = vector.extract_strided_slice %62 {offsets = [4, 0], sizes = [4, 128], strides = [1, 1]} : vector<9x128xf32> to vector<4x128xf32>
    %65 = vector.extract_strided_slice %62 {offsets = [8, 0], sizes = [1, 128], strides = [1, 1]} : vector<9x128xf32> to vector<1x128xf32>
    %66 = tpu.iota {dimensions = array<i32: 1>} : vector<1x128xi32>
    %67 = arith.sitofp %66 : vector<1x128xi32> to vector<1x128xf32>
    %68 = arith.subf %67, %65 : vector<1x128xf32>
    %cst_23 = arith.constant 5.000000e-01 : f32
    %69 = vector.broadcast %cst_23 : f32 to vector<1x128xf32>
    %70 = arith.cmpf ogt, %68, %69 : vector<1x128xf32>
    %cst_24 = arith.constant 1.000000e+00 : f32
    %cst_25 = arith.constant 0.000000e+00 : f32
    %71 = vector.broadcast %cst_24 : f32 to vector<1x128xf32>
    %72 = vector.broadcast %cst_25 : f32 to vector<1x128xf32>
    %73 = arith.select %70, %71, %72 : vector<1x128xi1>, vector<1x128xf32>
    %cst_26 = arith.constant 1.450000e+01 : f32
    %74 = vector.broadcast %cst_26 : f32 to vector<1x128xf32>
    %75 = arith.cmpf olt, %68, %74 : vector<1x128xf32>
    %cst_27 = arith.constant 1.000000e+00 : f32
    %cst_28 = arith.constant 0.000000e+00 : f32
    %76 = vector.broadcast %cst_27 : f32 to vector<1x128xf32>
    %77 = vector.broadcast %cst_28 : f32 to vector<1x128xf32>
    %78 = arith.select %75, %76, %77 : vector<1x128xi1>, vector<1x128xf32>
    %c1_i32 = arith.constant 1 : i32
    %79 = tpu.dynamic_rotate %1 by %c1_i32 dim 1 : vector<4x128xf32>, i32 -> vector<4x128xf32>
    %80 = vector.broadcast %73 : vector<1x128xf32> to vector<4x128xf32>
    %81 = arith.mulf %79, %80 : vector<4x128xf32>
    %c127_i32 = arith.constant 127 : i32
    %82 = tpu.dynamic_rotate %1 by %c127_i32 dim 1 : vector<4x128xf32>, i32 -> vector<4x128xf32>
    %83 = vector.broadcast %78 : vector<1x128xf32> to vector<4x128xf32>
    %84 = arith.mulf %82, %83 : vector<4x128xf32>
    %85 = tpu.concatenate %81, %1, %84 in 0 : vector<4x128xf32>, vector<4x128xf32>, vector<4x128xf32> -> vector<12x128xf32>
    %86 = arith.truncf %85 : vector<12x128xf32> to vector<12x128xbf16>
    %c0_29 = arith.constant 0 : index
    %c0_30 = arith.constant 0 : index
    %87 = vector.load %arg3[%c0_29, %c0_30] : memref<8x12xbf16, #tpu.memory_space<vmem>>, vector<8x12xbf16>
    %cst_31 = arith.constant dense<0.000000e+00> : vector<8x128xf32>
    %88 = tpu.matmul %87, %86, %cst_31 {dimension_numbers = #tpu.dot_dimension_numbers<[1], [0], [0], [1], [0, 0, 1, 1], [], []>} : vector<8x12xbf16>, vector<12x128xbf16>, vector<8x128xf32> -> vector<8x128xf32>
    %89 = vector.extract_strided_slice %88 {offsets = [0, 0], sizes = [4, 128], strides = [1, 1]} : vector<8x128xf32> to vector<4x128xf32>
    %90 = vector.broadcast %30 : vector<4x1xf32> to vector<4x128xf32>
    %91 = arith.addf %89, %90 : vector<4x128xf32>
    %92 = vector.extract_strided_slice %88 {offsets = [4, 0], sizes = [4, 128], strides = [1, 1]} : vector<8x128xf32> to vector<4x128xf32>
    %93 = vector.broadcast %31 : vector<4x1xf32> to vector<4x128xf32>
    %94 = arith.addf %92, %93 : vector<4x128xf32>
    %95 = arith.mulf %1, %63 : vector<4x128xf32>
    %96 = arith.addf %95, %64 : vector<4x128xf32>
    %97 = arith.negf %91 : vector<4x128xf32>
    %98 = math.exp %97 : vector<4x128xf32>
    %cst_32 = arith.constant 1.000000e+00 : f32
    %99 = vector.broadcast %cst_32 : f32 to vector<4x128xf32>
    %100 = arith.addf %99, %98 : vector<4x128xf32>
    %101 = arith.divf %99, %100 : vector<4x128xf32>
    %102 = arith.mulf %96, %101 : vector<4x128xf32>
    %103 = tpu.concatenate %102, %94 in 0 : vector<4x128xf32>, vector<4x128xf32> -> vector<8x128xf32>
    %cst_33 = arith.constant dense<0.000000e+00> : vector<8x8xf32>
    %104 = tpu.matmul %103, %14, %cst_33 {dimension_numbers = #tpu.dot_dimension_numbers<[1], [0], [0], [1], [0, 0, 1, 1], [], []>} : vector<8x128xf32>, vector<128x8xf32>, vector<8x8xf32> -> vector<8x8xf32>
    %105 = vector.extract_strided_slice %104 {offsets = [0, 0], sizes = [4, 8], strides = [1, 1]} : vector<8x8xf32> to vector<4x8xf32>
    %106 = vector.extract_strided_slice %104 {offsets = [4, 0], sizes = [4, 8], strides = [1, 1]} : vector<8x8xf32> to vector<4x8xf32>
    %cst_34 = arith.constant dense<0xFF800000> : vector<8xf32>
    %107 = vector.multi_reduction <maximumf>, %105, %cst_34 [0] : vector<4x8xf32> to vector<8xf32>
    %108 = vector.shape_cast %107 : vector<8xf32> to vector<1x8xf32>
    %109 = vector.broadcast %108 : vector<1x8xf32> to vector<4x8xf32>
    %110 = arith.subf %105, %109 : vector<4x8xf32>
    %111 = math.exp %110 : vector<4x8xf32>
    %cst_35 = arith.constant dense<0xFF800000> : vector<8xf32>
    %112 = vector.multi_reduction <maximumf>, %106, %cst_35 [0] : vector<4x8xf32> to vector<8xf32>
    %113 = vector.shape_cast %112 : vector<8xf32> to vector<1x8xf32>
    %114 = vector.broadcast %113 : vector<1x8xf32> to vector<4x8xf32>
    %115 = arith.subf %106, %114 : vector<4x8xf32>
    %116 = math.exp %115 : vector<4x8xf32>
    %cst_36 = arith.constant dense<0.000000e+00> : vector<8xf32>
    %117 = vector.multi_reduction <add>, %111, %cst_36 [0] : vector<4x8xf32> to vector<8xf32>
    %118 = vector.shape_cast %117 : vector<8xf32> to vector<1x8xf32>
    %119 = tpu.reciprocal %118 {approx = true} : vector<1x8xf32> -> vector<1x8xf32>
    %120 = vector.broadcast %119 : vector<1x8xf32> to vector<4x8xf32>
    %121 = arith.mulf %111, %120 : vector<4x8xf32>
    %cst_37 = arith.constant dense<0.000000e+00> : vector<8xf32>
    %122 = vector.multi_reduction <add>, %116, %cst_37 [0] : vector<4x8xf32> to vector<8xf32>
    %123 = vector.shape_cast %122 : vector<8xf32> to vector<1x8xf32>
    %124 = tpu.reciprocal %123 {approx = true} : vector<1x8xf32> -> vector<1x8xf32>
    %125 = vector.broadcast %124 : vector<1x8xf32> to vector<4x8xf32>
    %126 = arith.mulf %116, %125 : vector<4x8xf32>
    %127 = tpu.concatenate %121, %126 in 0 : vector<4x8xf32>, vector<4x8xf32> -> vector<8x8xf32>
    %cst_38 = arith.constant dense<0.000000e+00> : vector<8x128xf32>
    %128 = tpu.matmul %127, %27, %cst_38 {dimension_numbers = #tpu.dot_dimension_numbers<[1], [0], [0], [1], [0, 0, 1, 1], [], []>} : vector<8x8xf32>, vector<8x128xf32>, vector<8x128xf32> -> vector<8x128xf32>
    %129 = vector.extract_strided_slice %128 {offsets = [0, 0], sizes = [4, 128], strides = [1, 1]} : vector<8x128xf32> to vector<4x128xf32>
    %130 = arith.mulf %129, %94 : vector<4x128xf32>
    %131 = vector.extract_strided_slice %128 {offsets = [4, 0], sizes = [4, 128], strides = [1, 1]} : vector<8x128xf32> to vector<4x128xf32>
    %132 = arith.mulf %131, %102 : vector<4x128xf32>
    %133 = arith.addf %130, %132 : vector<4x128xf32>
    %cst_39 = arith.constant 1.000000e+00 : f32
    %134 = vector.broadcast %cst_39 : f32 to vector<1x4xf32>
    %cst_40 = arith.constant dense<0.000000e+00> : vector<1x128xf32>
    %135 = tpu.matmul %134, %133, %cst_40 {dimension_numbers = #tpu.dot_dimension_numbers<[1], [0], [0], [1], [0, 0, 1, 1], [], []>} : vector<1x4xf32>, vector<4x128xf32>, vector<1x128xf32> -> vector<1x128xf32>
    %136 = arith.negf %135 : vector<1x128xf32>
    %137 = math.exp %136 : vector<1x128xf32>
    %cst_41 = arith.constant 1.000000e+00 : f32
    %138 = vector.broadcast %cst_41 : f32 to vector<1x128xf32>
    %139 = arith.addf %138, %137 : vector<1x128xf32>
    %140 = arith.divf %138, %139 : vector<1x128xf32>
    %141 = vector.broadcast %140 : vector<1x128xf32> to vector<4x128xf32>
    %142 = arith.mulf %1, %141 : vector<4x128xf32>
    %c0_42 = arith.constant 0 : index
    %c0_43 = arith.constant 0 : index
    %c0_44 = arith.constant 0 : index
    %143 = vector.load %arg4[%c0_42, %c0_43, %c0_44] : memref<1x4x128xf32, #tpu.memory_space<vmem>>, vector<1x4x128xf32>
    %144 = vector.shape_cast %143 : vector<1x4x128xf32> to vector<4x128xf32>
    %145 = vector.shape_cast %142 : vector<4x128xf32> to vector<1x4x128xf32>
    tpu.vector_store %arg4[%c0_42, %c0_43, %c0_44], %145 {strides = array<i32>} : memref<1x4x128xf32, #tpu.memory_space<vmem>>, vector<1x4x128xf32>,
    return
  }
  func.func @transform_0(%arg0: i32) -> (i32, i32, i32) {
    %c0_i32 = arith.constant 0 : i32
    %c0_i32_0 = arith.constant 0 : i32
    %c0_i32_1 = arith.constant 0 : i32
    return %arg0, %c0_i32, %c0_i32_0 : i32, i32, i32
  }
  func.func @transform_1(%arg0: i32) -> (i32, i32) {
    %c0_i32 = arith.constant 0 : i32
    %c0_i32_0 = arith.constant 0 : i32
    %c0_i32_1 = arith.constant 0 : i32
    return %c0_i32, %c0_i32_0 : i32, i32
  }
  func.func @transform_2(%arg0: i32) -> (i32, i32) {
    %c0_i32 = arith.constant 0 : i32
    %c0_i32_0 = arith.constant 0 : i32
    %c0_i32_1 = arith.constant 0 : i32
    return %c0_i32, %c0_i32_0 : i32, i32
  }
  func.func @transform_3(%arg0: i32) -> (i32, i32, i32) {
    %c0_i32 = arith.constant 0 : i32
    %c0_i32_0 = arith.constant 0 : i32
    %c0_i32_1 = arith.constant 0 : i32
    return %arg0, %c0_i32, %c0_i32_0 : i32, i32, i32
  }
}

</mosaic_0001>

<bundles_post_ra>
// kernel: tpu_custom_call.1
= control target key start
LH: loop header
LB: loop body
LE: loop exit
PB: predicated region body
PF: predicated region fallthrough
CT: control target
= control target key end

     0   :  { %8 = vsyncpa [#allocation3], 0  ;;  %s1988_s0 = inlined_call_operand.hbm [shape: f32[2,4,128], index: 0, kind: input, shape index: {}]   ;;  %s1989_s1 = inlined_call_operand.hbm [shape: f32[4,18], index: 1, kind: input, shape index: {}]   ;;  %s1990_s2 = inlined_call_operand.vmem [shape: bf16[8,12], index: 2, kind: input, shape index: {}]   ;;  %s1991_s3 = inlined_call_operand.hbm [shape: f32[2,4,128], index: 3, kind: output, shape index: {}]  }
   0x1   :  { %10 = vsyncpa [#allocation3 + $0x1], 0 }
   0x2   :  { %11 = vsyncpa [#allocation6], 0 }
   0x3   :  { %12 = vsyncpa [#allocation4], 0 }
   0x4   :  { %14 = vsyncpa [#allocation4 + $0x1], 0  ;;  %s1477_s12 = smov 0   ;;  %s1479_s13 = smov 0  }
   0x5   :  { %s1481_s14 = smov 0   ;;  %s1483_s15 = smov 0  }
   0x6 LB: > { %s1498_s16 = sadd.s32 4294967295, %s1441_s15   ;;  %s986_s17 = sadd.s32 4294967294, %s1441_s15   ;;  %s1441_s15 = sphi %s1483_s15, %s2094_s15   ;;  %s1437_s14 = sphi %s1481_s14, %s2093_s14   ;;  %s1433_s13 = sphi %s1479_s13, %s2092_s13   ;;  %s1429_s12 = sphi %s1477_s12, %s2091_s12  }
   0x7   : > { %p40_p0 = scmp.ne.s32.totalorder %s1433_s13, %s1429_s12  ;;  %p1992_p1 = scmp.eq.s32.totalorder %s1498_s16, 0 }
   0x8   : > { %p112_p3 = scmp.eq.s32.totalorder %s986_s17, 1  ;;  %p987_p5 = scmp.ge.s32.totalorder %s1441_s15, 1 }
   0x9   : > { %p1507_p4 = por %p1992_p1, %p40_p0  ;;  %p119_p7 = scmp.lt.s32.totalorder %s1441_s15, 3 }
   0xa   : > { %p1512_p6 = por %p112_p3, %p40_p0  ;;  %s1443_s21 = smov [#allocation5]  }
   0xb   : > { %s2014_s18 = scalar_select %p1507_p4, 1, 0 }
   0xc   : > { %s2015_s19 = scalar_select %p1512_p6, 1, 0 }
   0xd   : > { %p1517_p8 = pnand %p987_p5, %p119_p7  ;;  %s132_s22 = sshll.u32 %s1443_s21, 4  ;;  %s133_s22 = int_to_ptr.vmem [resolvable:$true] %s132_s22 }
   0xe   : > { %s1525_s23 = sadd.s32 1, %s1441_s15   ;;  %s27_s27 = sadd.s32 1, %s1437_s14 }
   0xf   : > { %s2016_s20 = scalar_select %p1517_p8, 1, 0 }
  0x10   : > { %p1232_p10 = pneg %p1517_p8  ;;  %s24_s25 = ssub.s32 %s1441_s15, %s1525_s23 }
  0x11   : > { %p1535_p12 = scmp.eq.s32.totalorder %s24_s25, 0  ;;  %s1313_s30 = scalar_lea.hbm %s1989_s1, 64 }
  0x12   : > { %p1529_p11 = pnand %p1232_p10, %p1992_p1  ;;  %p1314_p0 = scmp.ne.s32.totalorder %s1989_s1, %s1313_s30 }
  0x13   : > { %s2018_s26 = scalar_select %p1535_p12, 1, 0 }
  0x14   : > { %p1315_p3 = pneg %p1529_p11  ;;  %p1320_p10 = scmp.lt.u32.totalorder %s1313_s30, %s1989_s1 }
  0x16   : > { %p1316_p5 = pnand %p1315_p3, %p1314_p0 }
  0x18   : > { %p1317_p7 = pneg %p1316_p5 }
  0x1a   : > { %p1322_p9 = pnand %p1320_p10, %p1317_p7 }
  0x1c   : > { %1325 = shalt.err (!%p1322_p9)
}
  0x1d   : > { %s1326_s8 = scalar_lea.vmem %s133_s22, 64  ;;  %p1334_p6 = scmp.lt.s32.totalorder %s133_s22, %s133_s22 }
  0x1e   : > { %p1327_p1 = scmp.ne.s32.totalorder %s133_s22, %s1326_s8  ;;  %p1335_p4 = scmp.lt.s32.totalorder %s1326_s8, %s1326_s8 }
  0x20   : > { %p1329_p2 = pnand %p1327_p1, %p1315_p3  ;;  %p1336_p8 = por %p1335_p4, %p1334_p6 }
  0x22   : > { %p1330_p13 = pneg %p1329_p2 }
  0x24   : > { %p1337_p12 = pnand %p1336_p8, %p1330_p13 }
  0x26   : > { %1340 = shalt.err (!%p1337_p12)
}
  0x27   : > { %1235 = dma.hbm_to_vmem [thread:$0]  (!%p1529_p11), %s1989_s1, 64, %s133_s22, [#allocation6]  }
  0x28   : > { %p2019_p1 = scmp.ne.s32.totalorder %s2018_s26, 0  ;;  %p35_p2 = scmp.eq.s32.totalorder %s1441_s15, 0 }
  0x29   : > { %p2020_p4 = scmp.ne.s32.totalorder %s1437_s14, %s1433_s13  ;;  %p2021_p6 = scmp.eq.s32.totalorder %s1498_s16, 1 }
  0x2a   : > { %s1561_s11 = scalar_select %p2019_p1, %s1437_s14, %s27_s27  }
  0x2b   : > { %p1569_p8 = por %p2021_p6, %p2020_p4  ;;  %p1245_p9 = scmp.lt.s32.totalorder %s1441_s15, 2 }
  0x2c   : > { %s146_s21 = sand.u32 1, %s1437_s14   ;;  %p2023_p12 = pmov %p2020_p4 }
  0x2d   : > { %s990_s24 = sshll.u32 %s146_s21, 2  ;;  %s991_s25 = sshll.u32 %s1441_s15, 6 }
  0x2e   : > { %p36_p13 = por %p35_p2, %p2023_p12  ;;  %s1582_s22 = scalar_lea.hbm %s1988_s0, %s991_s25 }
  0x2f   : > { %s150_s26 = scalar_lea.vmem [#allocation2], %s990_s24  ;;  %s147_s4 = scalar_lea.sflag [#allocation3], %s146_s21 }
  0x30   : > { %s157_s27 = sshll.u32 %s150_s26, 4  ;;  %p1584_p11 = pnand %p1245_p9, %p36_p13  ;;  %s1588_s27 = int_to_ptr.vmem [resolvable:$true] %s157_s27 }
  0x31   : > { %s1341_s5 = scalar_lea.hbm %s1582_s22, 64  ;;  %s1346_s8 = scalar_lea.hbm %s1988_s0, 128 }
  0x32   : > { %p1342_p0 = scmp.ne.s32.totalorder %s1582_s22, %s1341_s5  ;;  %p1343_p3 = pneg %p1584_p11 }
  0x33   : > { %p1347_p10 = scmp.lt.u32.totalorder %s1582_s22, %s1988_s0  ;;  %p1348_p1 = scmp.lt.u32.totalorder %s1346_s8, %s1341_s5 }
  0x34   : > { %p1344_p5 = pnand %p1343_p3, %p1342_p0  ;;  %p1350_p4 = scmp.lt.u32.totalorder %s1341_s5, %s1582_s22 }
  0x35   : > { %p1349_p2 = por %p1348_p1, %p1347_p10 }
  0x36   : > { %p1345_p7 = pneg %p1344_p5 }
  0x37   : > { %p1351_p6 = por %p1350_p4, %p1349_p2 }
  0x39   : > { %p1352_p9 = pnand %p1351_p6, %p1345_p7 }
  0x3b   : > { %1355 = shalt.err (!%p1352_p9)
}
  0x3c   : > { %s1356_s21 = scalar_lea.vmem %s1588_s27, 64  ;;  %s1444_s24 = smov [#allocation2]  }
  0x3d   : > { %p1357_p12 = scmp.ne.s32.totalorder %s1588_s27, %s1356_s21  ;;  %s1361_s25 = sshll.u32 %s1444_s24, 4  ;;  %s1362_s25 = int_to_ptr.vmem [resolvable:$false] %s1361_s25 }
  0x3e   : > { %s1363_s28 = scalar_lea.vmem %s1362_s25, 128  ;;  %p1364_p5 = scmp.lt.s32.totalorder %s1588_s27, %s1362_s25 }
  0x3f   : > { %p1359_p13 = pnand %p1357_p12, %p1343_p3  ;;  %p1365_p10 = scmp.lt.s32.totalorder %s1363_s28, %s1356_s21 }
  0x41   : > { %p1360_p0 = pneg %p1359_p13  ;;  %p1366_p1 = por %p1365_p10, %p1364_p5 }
  0x43   : > { %p1367_p2 = pnand %p1366_p1, %p1360_p0 }
  0x45   : > { %1370 = shalt.err (!%p1367_p2)
}
  0x46   : > { %1239 = dma.hbm_to_vmem [thread:$0]  (!%p1584_p11), %s1582_s22, 64, %s1588_s27, %s147_s4  }
  0x47   : > { %p2025_p7 = scmp.ne.s32.totalorder %s2016_s20, 0 }
  0x48   : > { %s1618_s29 = sand.u32 (!%p2025_p7), 1, %s1433_s13   ;;  %p2026_p3 = scmp.ne.s32.totalorder (!%p2025_p7), %s2014_s18, 0 }
  0x49   : > { %166 = sbr.rel (%p2025_p7) target bundleno = 1826 (0x722), region = 32  ;;  %s993_s26 = sshll.u32 (!%p2025_p7), %s1618_s29, 2 }
  0x4a   : > { %s169_s5 = scalar_lea.sflag (!%p2025_p7), [#allocation3], %s1618_s29  ;;  %s1624_s6 = scalar_lea.vmem (!%p2025_p7), [#allocation2], %s993_s26 }
  0x50   : > { %1416 = dma.done.wait (%p2026_p3), %s169_s5, 64  }
  0x51   : > { %1418 = vsyncadd (%p2026_p3), %s169_s5, 4294967232  ;;  %v201_v0 = vlaneseq  ;;  %p2027_p11 = scmp.eq.s32.totalorder %s1498_s16, 0 }
  0x53   : > { %1420 = dma.done.wait (%p2027_p11), [#allocation6], 64   ;;  %p2028_p4 = pmov %p2027_p11 }
  0x54   : > { %v1445_v1 = vmov 0.0|0.0   ;;  %v1635_v2 = vshrl.u32 %v201_v0, 7  ;;  %v1637_v3 = vand.u32 127, %v201_v0  ;;  %vm1997_vm0 = vmmov 0   ;;  %v1792_v52 = vld [vmem:[%s1624_s6] sm:$0xf] }
  0x55   : > { %1422 = vsyncadd (%p2028_p4), [#allocation6], 4294967232  ;;  %1176 = vmatprep.subr.bf16.mxu0 %v1445_v1  ;;  %v1447_v4 = vmov 0.0   ;;  %v2029_v18 = vmov 0  ;;  %v1448_v23 = vmov 0.0625|0.0625   ;;  %v308_v53 = vmul.f32 %v1792_v52, %v1792_v52 }
  0x56   : > { %1117 = vmatprep.mubr.msk.f32.mxu0 %vm1997_vm0, %v1447_v4  ;;  %v203_v5 = vadd.s32 8, %v1635_v2  ;;  %v1643_v6 = vmul.u32 16, %v1637_v3  ;;  %v204_v7 = vadd.s32 16, %v1635_v2  ;;  %v205_v8 = vadd.s32 24, %v1635_v2  ;;  %s1449_s18 = smov 8   ;;  %s1451_s20 = smov 1  }
  0x57   : > { %v206_v9 = vadd.s32 32, %v1635_v2  ;;  %v207_v10 = vadd.s32 40, %v1635_v2  ;;  %v208_v16 = vadd.s32 48, %v1635_v2  ;;  %v209_v17 = vadd.s32 56, %v1635_v2  ;;  %512 = vrot.lane.b32.xlu1 %v1792_v52, %s1451_s20  ;;  %s1452_s22 = smov 127   ;;  %s1453_s27 = smov 120  }
  0x58   : > { %v221_v11 = vsub.s32 %v1635_v2, %v1643_v6  ;;  %v222_v12 = vsub.s32 %v203_v5, %v1643_v6  ;;  %v223_v13 = vsub.s32 %v204_v7, %v1643_v6  ;;  %v224_v14 = vsub.s32 %v205_v8, %v1643_v6  ;;  %s1039_s7 = sshll.u32 %s1498_s16, 6  ;;  %s198_s8 = scalar_lea.vmem [#allocation7], %s993_s26 }
  0x59   : > { %v225_v15 = vsub.s32 %v206_v9, %v1643_v6  ;;  %v226_v19 = vsub.s32 %v207_v10, %v1643_v6  ;;  %v227_v21 = vsub.s32 %v208_v16, %v1643_v6  ;;  %v228_v22 = vsub.s32 %v209_v17, %v1643_v6  ;;  %s906_s9 = sshll.u32 %s198_s8, 4  ;;  %s1944_s24 = scalar_lea.hbm %s1991_s3, %s1039_s7  ;;  %s1946_s9 = int_to_ptr.vmem [resolvable:$true] %s906_s9 }
  0x5a   : > { %vm237_vm1 = vcmp.ge.s32.totalorder %v221_v11, 0  ;;  %vm238_vm2 = vcmp.ge.s32.totalorder %v222_v12, 0  ;;  %vm253_vm3 = vcmp.lt.s32.totalorder %v221_v11, 16  ;;  %vm254_vm4 = vcmp.lt.s32.totalorder %v222_v12, 16  ;;  %s893_s25 = scalar_lea.sflag [#allocation4], %s1618_s29  ;;  %s1371_s16 = scalar_lea.vmem %s1946_s9, 64 }
  0x5b   : > { %vm1657_vm5 = vmand %vm237_vm1, %vm253_vm3  ;;  %vm239_vm6 = vcmp.ge.s32.totalorder %v223_v13, 0  ;;  %vm255_vm7 = vcmp.lt.s32.totalorder %v223_v13, 16  ;;  %vm240_vm9 = vcmp.ge.s32.totalorder %v224_v14, 0  ;;  %vm256_vm10 = vcmp.lt.s32.totalorder %v224_v14, 16  ;;  %519 = vrot.lane.b32.xlu1 %v1792_v52, %s1452_s22  ;;  %p1372_p6 = scmp.ne.s32.totalorder %s1946_s9, %s1371_s16  ;;  %s1456_s28 = smov [#allocation7]  }
  0x5c   : > { %v2030_v18 = vsel %vm1657_vm5, 4294967295, %v2029_v18  ;;  %vm1662_vm8 = vmand %vm238_vm2, %vm254_vm4  ;;  %v2033_v24 = vmov 0  ;;  %vm241_vm13 = vcmp.ge.s32.totalorder %v225_v15, 0  ;;  %vm257_vm14 = vcmp.lt.s32.totalorder %v225_v15, 16  ;;  %s1375_s26 = sshll.u32 %s1456_s28, 4  ;;  %s1376_s26 = int_to_ptr.vmem [resolvable:$false] %s1375_s26 }
  0x5d   : > { %vm1995_vm11 = vmpackc.low %vm1662_vm8, %vm1657_vm5  ;;  %v210_v25 = vadd.s32 64, %v1635_v2  ;;  %v211_v26 = vadd.s32 72, %v1635_v2  ;;  %v2035_v27 = vmov 0  ;;  %vm242_vm1 = vcmp.ge.s32.totalorder %v226_v19, 0  ;;  %p1373_p9 = pnand %p1372_p6, %p1569_p8  ;;  %s1377_s5 = scalar_lea.vmem %s1376_s26, 128 }
  0x5e   : > { %1178 = vmatpush3.bf16.msk.msra.mxu0 %vm1995_vm11, %v1448_v23  ;;  %vm1678_vm12 = vmand %vm239_vm6, %vm255_vm7  ;;  %vm258_vm2 = vcmp.lt.s32.totalorder %v226_v19, 16  ;;  %v212_v28 = vadd.s32 80, %v1635_v2  ;;  %v213_v30 = vadd.s32 88, %v1635_v2  ;;  %v2037_v31 = vmov 0  ;;  %p1378_p13 = scmp.lt.s32.totalorder %s1946_s9, %s1376_s26  ;;  %p1379_p0 = scmp.lt.s32.totalorder %s1377_s5, %s1371_s16 }
  0x5f   : > { %v2034_v24 = vsel %vm1678_vm12, 4294967295, %v2033_v24  ;;  %1179 = vmatprep.subr.bf16.mxu0 %v1445_v1  ;;  %vm1685_vm15 = vmand %vm240_vm9, %vm256_vm10  ;;  %v229_v29 = vsub.s32 %v210_v25, %v1643_v6  ;;  %vm243_vm6 = vcmp.ge.s32.totalorder %v227_v21, 0  ;;  %vm259_vm7 = vcmp.lt.s32.totalorder %v227_v21, 16  ;;  %p1374_p12 = pneg %p1373_p9 }
  0x60   : > { %v2036_v27 = vsel %vm1685_vm15, 4294967295, %v2035_v27  ;;  %vm1996_vm3 = vmpackc.low %vm1685_vm15, %vm1678_vm12  ;;  %v230_v32 = vsub.s32 %v211_v26, %v1643_v6  ;;  %v2039_v33 = vmov 0  ;;  %vm244_vm10 = vcmp.ge.s32.totalorder %v228_v22, 0  ;;  %v307_v26 = vld [vmem:[#allocation5] sm:$0xf]  ;;  %p1380_p5 = por %p1379_p0, %p1378_p13 }
  0x61   : > { %vm1696_vm4 = vmand %vm241_vm13, %vm257_vm14  ;;  %vm260_vm13 = vcmp.lt.s32.totalorder %v228_v22, 16  ;;  %v231_v34 = vsub.s32 %v212_v28, %v1643_v6  ;;  %v214_v35 = vadd.s32 96, %v1635_v2  ;;  %v2041_v36 = vmov 0 }
  0x62   : > { %v2038_v31 = vsel %vm1696_vm4, 4294967295, %v2037_v31  ;;  %1181 = vmatpush3.bf16.msk.msra.mxu0 %vm1996_vm3, %v1448_v23  ;;  %vm1707_vm9 = vmand %vm242_vm1, %vm258_vm2  ;;  %vm245_vm1 = vcmp.ge.s32.totalorder %v229_v29, 0  ;;  %vm261_vm2 = vcmp.lt.s32.totalorder %v229_v29, 16  ;;  %v232_v37 = vsub.s32 %v213_v30, %v1643_v6  ;;  %p1381_p10 = pnand %p1380_p5, %p1374_p12 }
  0x63   : > { %v2040_v33 = vsel %vm1707_vm9, 4294967295, %v2039_v33  ;;  %1182 = vmatprep.subr.bf16.mxu0 %v1445_v1  ;;  %vm1718_vm11 = vmand %vm243_vm6, %vm259_vm7  ;;  %v215_v38 = vadd.s32 104, %v1635_v2  ;;  %v2043_v39 = vmov 0  ;;  %vm246_vm0 = vcmp.ge.s32.totalorder %v230_v32, 0 }
  0x64   : > { %v2042_v36 = vsel %vm1718_vm11, 4294967295, %v2041_v36  ;;  %vm1724_vm3 = vmand %vm244_vm10, %vm260_vm13  ;;  %vm262_vm14 = vcmp.lt.s32.totalorder %v230_v32, 16  ;;  %vm247_vm13 = vcmp.ge.s32.totalorder %v231_v34, 0  ;;  %vm263_vm12 = vcmp.lt.s32.totalorder %v231_v34, 16 }
  0x65   : > { %v2044_v39 = vsel %vm1724_vm3, 4294967295, %v2043_v39  ;;  %vm2045_vm6 = vmpackc.low %vm1707_vm9, %vm1696_vm4  ;;  %v233_v41 = vsub.s32 %v214_v35, %v1643_v6  ;;  %vm264_vm4 = vcmp.lt.s32.totalorder %v232_v37, 16  ;;  %v234_v43 = vsub.s32 %v215_v38, %v1643_v6 }
  0x66   : > { %1184 = vmatpush3.bf16.msk.msra.mxu0 %vm2045_vm6, %v1448_v23  ;;  %vm2004_vm7 = vmpackc.low %vm1724_vm3, %vm1718_vm11  ;;  %vm248_vm6 = vcmp.ge.s32.totalorder %v232_v37, 0  ;;  %v216_v44 = vadd.s32 112, %v1635_v2  ;;  %v217_v45 = vadd.s32 120, %v1635_v2  ;;  %v2060_v54 = vmov 0 }
  0x67   : > { %1185 = vmatprep.subr.bf16.mxu0 %v1445_v1  ;;  %vm1739_vm10 = vmand %vm245_vm1, %vm261_vm2  ;;  %vm249_vm2 = vcmp.ge.s32.totalorder %v233_v41, 0  ;;  %vm265_vm1 = vcmp.lt.s32.totalorder %v233_v41, 16  ;;  %vm250_vm9 = vcmp.ge.s32.totalorder %v234_v43, 0  ;;  %vm266_vm5 = vcmp.lt.s32.totalorder %v234_v43, 16 }
  0x68   : > { %vm1744_vm15 = vmand %vm246_vm0, %vm262_vm14  ;;  %v235_v48 = vsub.s32 %v216_v44, %v1643_v6  ;;  %v236_v49 = vsub.s32 %v217_v45, %v1643_v6  ;;  %v310_v56 = vrot.slane %v308_v53, 4  ;;  %v301_v32 = vmul.u32 16, %v1635_v2 }
  0x69   : > { %vm1761_vm0 = vmand %vm247_vm13, %vm263_vm12  ;;  %v1450_v35 = vmov 1.0   ;;  %v417_v43 = vcvt.s32.f32 %v1643_v6  ;;  %v506_v53 = vcvt.s32.f32 %v1637_v3 }
  0x6a   : > { %1187 = vmatpush3.bf16.msk.msra.mxu0 %vm2004_vm7, %v1448_v23  ;;  %vm1766_vm14 = vmand %vm248_vm6, %vm264_vm4  ;;  %vm251_vm7 = vcmp.ge.s32.totalorder %v235_v48, 0  ;;  %vm267_vm12 = vcmp.lt.s32.totalorder %v235_v48, 16  ;;  %vm252_vm11 = vcmp.ge.s32.totalorder %v236_v49, 0  ;;  %vm268_vm3 = vcmp.lt.s32.totalorder %v236_v49, 16 }
  0x6b   : > { %1188 = vmatprep.subr.bf16.mxu0 %v1445_v1  ;;  %vm2054_vm4 = vmpackc.low %vm1744_vm15, %vm1739_vm10  ;;  %v302_v34 = vsub.s32 %v1637_v3, %v301_v32  ;;  %v1454_v48 = vmov 17   ;;  %v1455_v49 = vmov 16   ;;  %v527_v3 = vrot.slane %v1792_v52, 4 }
  0x6c   : > { %vm1782_vm13 = vmand %vm249_vm2, %vm265_vm1  ;;  %1293 = vset.pattern.permute.xlu1 %v1454_v48  ;;  %1292 = vset.pattern.permute.xlu0 %v1455_v49 }
  0x6d   : > { %vm1787_vm6 = vmand %vm250_vm9, %vm266_vm5  ;;  %587 = vperm.xlu1 %1293, %v307_v26  }
  0x6e   : > { %1190 = vmatpush3.bf16.msk.msra.mxu0 %vm2054_vm4, %v1448_v23  ;;  %vm2059_vm1 = vmpackc.low %vm1766_vm14, %vm1761_vm0  ;;  %vm303_vm4 = vcmp.ge.s32.totalorder %v302_v34, 0 }
  0x6f   : > { %1191 = vmatprep.subr.bf16.mxu0 %v1445_v1  ;;  %vm2011_vm5 = vmpackc.low %vm1787_vm6, %vm1782_vm13 }
  0x70   : > { %vm1807_vm9 = vmand %vm251_vm7, %vm267_vm12  ;;  %vm2010_vm12 = vcmask 1043456  }
  0x71   : > { %v2061_v54 = vsel %vm1807_vm9, 4294967295, %v2060_v54  ;;  %vm1811_vm2 = vmand %vm252_vm11, %vm268_vm3  ;;  %v313_v57 = vsel %vm2010_vm12, %v1792_v52, %v310_v56  ;;  %vm2064_vm11 = vmmov 0   ;;  %vm2007_vm3 = vcmask 60416  }
  0x72   : > { %1193 = vmatpush3.bf16.msk.msra.mxu0 %vm2059_vm1, %v1448_v23  ;;  %vm2009_vm7 = vmpackc.low %vm1811_vm2, %vm1807_vm9  ;;  %vm304_vm1 = vcmp.lt.s32.totalorder %v302_v34, 16 }
  0x73   : > { %1194 = vmatprep.subr.bf16.mxu0 %v1445_v1 }
  0x76   : > { %1196 = vmatpush3.bf16.msk.msra.mxu0 %vm2011_vm5, %v1448_v23 }
  0x77   : > { %1197 = vmatprep.subr.bf16.mxu0 %v1445_v1 }
  0x7a   : > { %1199 = vmatpush3.bf16.msk.msra.mxu0 %vm2009_vm7, %v1448_v23 }
  0x7b   : > { %1166 = vmatprep.subr.mxu0 %v1447_v4 }
  0x7d   : > { %1118 = vmatmul.mubr.f32.vlgmr.msra.gmra.mrb[0].mxu0 %v313_v57 }
  0x7e   : > { %1168 = vmatprep.mubr.msk.f32.mxu0 %vm2064_vm11, %v1447_v4 }
  0xc9   : > { %v513_v6 = vpop.permute.xlu1 %512 }
 0x150   : > { %v380_v58 = vpop.f32.mrb[0].mxu0 }
 0x151   : > { %v385_v59 = vsel %vm2007_vm3, %v380_v58, 0.0  ;;  %v395_v60 = vrot.slane %v380_v58, 4  ;;  %v1119_v61 = vpop.f32.mrb[1].mxu0 }
 0x152   : > { %v386_v62 = vrot.slane %v385_v59, 4  ;;  %v520_v61 = vpop.permute.xlu1 %519 }
 0x153   : > { %v397_v63 = vsel %vm2007_vm3, %v395_v60, 0.0  ;;  %vm305_vm3 = vmand %vm303_vm4, %vm304_vm1  ;;  %vm2008_vm4 = vcmask 64512  }
 0x154   : > { %v387_v0 = vadd.f32 %v386_v62, %v385_v59  ;;  %v398_v5 = vrot.slane %v397_v63, 4  ;;  %1120 = vmatprep.subr.msk.mxu1 %vm305_vm3, %v1450_v35  ;;  %1167 = vmatpush3.msk.msra.mxu0 %vm305_vm3, %v1450_v35  ;;  %v1856_v59 = vsub.s32 0, %v1635_v2 }
 0x155   : > { %1121 = vmatpush3.msk.msra.mxu1 %vm305_vm3, %v1450_v35  ;;  %1171 = vmatprep.subr.mxu0 %v1447_v4 }
 0x156   : > { %v388_v7 = vrot.slane %v387_v0, 2  ;;  %v399_v8 = vadd.f32 %v398_v5, %v397_v63  ;;  %1125 = vmatprep.subr.bf16.mxu1 %v1447_v4  ;;  %v588_v42 = vpop.permute.xlu1 %587 }
 0x157   : > { %v589_v47 = vrot.slane %v588_v42, 4 }
 0x158   : > { %v389_v9 = vadd.f32 %v388_v7, %v387_v0  ;;  %v400_v10 = vrot.slane %v399_v8, 2 }
 0x15a   : > { %v401_v11 = vadd.f32 %v400_v10, %v399_v8  ;;  %v390_v12 = vrot.slane %v389_v9, 1  ;;  %v531_v10 = vld [vmem:[%s1990_s2] sm:$0xf] }
 0x15c   : > { %v402_v13 = vrot.slane %v401_v11, 1  ;;  %v391_v14 = vadd.f32 %v390_v12, %v389_v9 }
 0x15e   : > { %v403_v15 = vadd.f32 %v402_v13, %v401_v11  ;;  %v393_v16 = vmul.f32 0.25, %v391_v14 }
 0x160   : > { %v404_v17 = vmul.f32 0.25, %v403_v15  ;;  %v405_v19 = vmul.f32 %v393_v16, %v393_v16 }
 0x162   : > { %v406_v21 = vsub.f32 %v404_v17, %v405_v19 }
 0x164   : > { %v407_v22 = vmax.f32 %v406_v21, 0.0 }
 0x166   : > { %v408_v25 = vadd.f32 1e-05, %v407_v22 }
 0x168   : > { %1295 = vrsqrt.f32 %v408_v25 }
 0x172   : > { %v1296_v28 = vpop.eup %1295 }
 0x173   : > { %v410_v29 = vmul.f32 %v1296_v28, %v307_v26 }
 0x175   : > { %v411_v30 = vmul.f32 %v410_v29, %v393_v16 }
 0x177   : > { %413 = vrot.lane.b32.xlu0 %v411_v30, %s1449_s18 }
 0x1e9   : > { %v414_v37 = vpop.permute.xlu0 %413 }
 0x1ea   : > { %v416_v38 = vsub.f32 %v307_v26, %v414_v37 }
 0x1ec   : > { %v419_v41 = vrot.slane %v416_v38, 4 }
 0x1ee   : > { %420 = vrot.lane.b32.xlu0 %v419_v41, %s1453_s27 }
 0x1f2   : > { %582 = vperm.xlu0 %1292, %v307_v26  }
 0x1f6   : > { %1294 = vset.pattern.permute.xlu0 %v1454_v48 }
 0x260   : > { %v421_v44 = vpop.permute.xlu0 %420 }
 0x261   : > { %v423_v45 = vsel %vm2010_vm12, %v410_v29, %v421_v44 }
 0x262   : > { %1122 = vmatprep.mubr.msk.f32.mxu1 %vm2008_vm4, %v423_v45 }
 0x263   : > { %1123 = vmatmul.mubr.msk.f32.vlgmr.msra.gmra.mrb[0].mxu1 %vm2008_vm4, %v417_v43  ;;  %vm536_vm4 = vcmask 1045504  }
 0x264   : > { %1127 = vmatprep.mubr.msk.bf16.mxu1 %vm2064_vm11, %v1447_v4 }
 0x336   : > { %v1124_v56 = vpop.f32.mrb[0].mxu1 }
 0x337   : > { %v507_v57 = vsub.f32 %v506_v53, %v1124_v56  ;;  %v497_v58 = vpop.f32.mrb[1].mxu1 }
 0x338   : > { %v594_v46 = vrot.slane %v497_v58, 4 }
 0x339   : > { %vm508_vm3 = vcmp.gt.f32.partialorder %v507_v57, 0.5  ;;  %vm510_vm1 = vcmp.lt.f32.partialorder %v507_v57, 14.5 }
 0x33a   : > { %v509_v60 = vsel %vm508_vm3, 1.0, %v1447_v4  ;;  %v511_v62 = vsel %vm510_vm1, 1.0, %v1447_v4  ;;  %vm532_vm3 = vcmask 97280   ;;  %vm2065_vm1 = vnez %v2030_v18  ;;  %v583_v18 = vpop.permute.xlu0 %582 }
 0x33b   : > { %v517_v63 = vrot.slane %v509_v60, %v1856_v59  ;;  %v524_v0 = vrot.slane %v511_v62, %v1856_v59  ;;  %vm2066_vm7 = vmpackc.low %vm1662_vm8, %vm2065_vm1  ;;  %vm2071_vm8 = vnez %v2038_v31  ;;  %vm2073_vm1 = vnez %v2044_v39 }
 0x33d   : > { %v518_v5 = vmul.f32 %v517_v63, %v513_v6  ;;  %v525_v7 = vmul.f32 %v524_v0, %v520_v61 }
 0x33f   : > { %v529_v8 = vsel %vm2010_vm12, %v518_v5, %v527_v3  ;;  %vm2068_vm12 = vnez %v2034_v24 }
 0x340   : > { %v530_v2 = vpack.c.bf16 %v525_v7, %v529_v8 }
 0x342   : > { %v538_v9 = vsel %vm536_vm4, %v530_v2, 0  ;;  %vm2067_vm4 = vnez %v2036_v27 }
 0x343   : > { %1126 = vmatpush3.bf16.msra.mxu1 %v538_v9  ;;  %vm2069_vm5 = vmpackc.low %vm2067_vm4, %vm2068_vm12  ;;  %vm2086_vm4 = vcmask 64512  }
 0x344   : > { %1200 = vmatprep.subr.bf16.mxu1 %v1445_v1  ;;  %vm2077_vm12 = vmpackc.low %vm1766_vm14, %vm1761_vm0  ;;  %vm2081_vm0 = vcmask 1043456   ;;  %vm685_vm14 = vcmask 64516  }
 0x346   : > { %1128 = vmatmul.mubr.msk.bf16.vlgmr.msra.gmra.mrb[4].mxu1 %vm532_vm3, %v531_v10  ;;  %vm2070_vm3 = vnez %v2040_v33 }
 0x347   : > { %1202 = vmatpush3.bf16.msk.msra.mxu1 %vm2066_vm7, %v1448_v23  ;;  %1163 = vmatprep.mubr.msk.f32.mxu1 %vm2064_vm11, %v1447_v4  ;;  %vm2072_vm7 = vmpackc.low %vm2070_vm3, %vm2071_vm8  ;;  %vm2074_vm11 = vnez %v2042_v36  ;;  %vm2087_vm3 = vmmov 0   ;;  %vm803_vm8 = vcmask 31744  }
 0x348   : > { %1203 = vmatprep.subr.bf16.mxu1 %v1445_v1  ;;  %vm2075_vm9 = vmpackc.low %vm2073_vm1, %vm2074_vm11 }
 0x349   : > { %vm2085_vm11 = vmmov %vm2081_vm0 }
 0x34b   : > { %1205 = vmatpush3.bf16.msk.msra.mxu1 %vm2069_vm5, %v1448_v23  ;;  %vm2076_vm5 = vmpackc.low %vm1744_vm15, %vm1739_vm10  ;;  %vm2079_vm15 = vnez %v2061_v54 }
 0x34c   : > { %1206 = vmatprep.subr.bf16.mxu1 %v1445_v1  ;;  %vm2080_vm10 = vmpackc.low %vm1811_vm2, %vm2079_vm15 }
 0x34f   : > { %1208 = vmatpush3.bf16.msk.msra.mxu1 %vm2072_vm7, %v1448_v23  ;;  %vm2088_vm7 = vmmov %vm2081_vm0 }
 0x350   : > { %1209 = vmatprep.subr.bf16.mxu1 %v1445_v1 }
 0x353   : > { %1211 = vmatpush3.bf16.msk.msra.mxu1 %vm2075_vm9, %v1448_v23  ;;  %vm2078_vm9 = vmpackc.low %vm1787_vm6, %vm1782_vm13  ;;  %vm2082_vm13 = vcmask 60416  }
 0x354   : > { %1212 = vmatprep.subr.bf16.mxu1 %v1445_v1  ;;  %vm2083_vm6 = vmmov %vm2082_vm13 }
 0x355   : > { %vm2084_vm2 = vmmov %vm2083_vm6 }
 0x357   : > { %1214 = vmatpush3.bf16.msk.msra.mxu1 %vm2076_vm5, %v1448_v23 }
 0x358   : > { %1215 = vmatprep.subr.bf16.mxu1 %v1445_v1 }
 0x35b   : > { %1217 = vmatpush3.bf16.msk.msra.mxu1 %vm2077_vm12, %v1448_v23 }
 0x35c   : > { %1218 = vmatprep.subr.bf16.mxu1 %v1445_v1 }
 0x35f   : > { %1220 = vmatpush3.bf16.msk.msra.mxu1 %vm2078_vm9, %v1448_v23 }
 0x360   : > { %1221 = vmatprep.subr.bf16.mxu1 %v1445_v1  ;;  %v592_v1 = vmul.f32 %v497_v58, %v1792_v52 }
 0x362   : > { %v596_v50 = vadd.f32 %v594_v46, %v592_v1 }
 0x363   : > { %1223 = vmatpush3.bf16.msk.msra.mxu1 %vm2080_vm10, %v1448_v23 }
 0x419   : > { %v574_v20 = vpop.f32.mrb[4].mxu1 }
 0x41a   : > { %v585_v24 = vadd.f32 %v583_v18, %v574_v20  ;;  %v1129_v27 = vpop.f32.mrb[5].mxu1  ;;  %v591_v54 = vadd.f32 %v589_v47, %v574_v20 }
 0x41b   : > { %v577_v31 = vpop.f32.mrb[6].mxu1 }
 0x41c   : > { %v1016_v33 = vmul.f32 -1.442695, %v585_v24  ;;  %v1130_v36 = vpop.f32.mrb[7].mxu1  ;;  %v792_v18 = vrot.slane %v591_v54, 4 }
 0x41e   : > { %1297 = vpow2.f32 %v1016_v33 }
 0x428   : > { %v1298_v39 = vpop.eup %1297 }
 0x429   : > { %v600_v40 = vadd.f32 1.0, %v1298_v39 }
 0x42b   : > { %1299 = vrcp.f32 %v600_v40 }
 0x435   : > { %v1300_v51 = vpop.eup %1299 }
 0x436   : > { %v603_v23 = vmul.f32 %v1300_v51, %v596_v50 }
 0x438   : > { %v604_v55 = vsel %vm2081_vm0, %v603_v23, %v591_v54  ;;  %v796_v20 = vrot.slane %v603_v23, 4 }
 0x439   : > { %1164 = vmatmul.mubr.f32.vlgmr.msra.gmra.mrb[2].mxu1 %v604_v55 }
 0x50c   : > { %v671_v11 = vpop.f32.mrb[2].mxu1 }
 0x50d   : > { %v675_v12 = vsel %vm2082_vm13, %v671_v11, -inf  ;;  %v686_v13 = vsel %vm685_vm14, %v671_v11, -inf  ;;  %v1165_v14 = vpop.f32.mrb[3].mxu1 }
 0x50e   : > { %v676_v15 = vrot.slane %v675_v12, 4  ;;  %v687_v16 = vrot.slane %v686_v13, 4 }
 0x510   : > { %v677_v17 = vmax.f32 %v675_v12, %v676_v15  ;;  %v688_v19 = vmax.f32 %v686_v13, %v687_v16 }
 0x512   : > { %v678_v21 = vrot.slane %v677_v17, 2  ;;  %v689_v22 = vrot.slane %v688_v19, 2 }
 0x514   : > { %v679_v25 = vmax.f32 %v677_v17, %v678_v21  ;;  %v690_v26 = vmax.f32 %v688_v19, %v689_v22 }
 0x516   : > { %v680_v28 = vrot.slane %v679_v25, 1  ;;  %v691_v29 = vrot.slane %v690_v26, 1 }
 0x518   : > { %v681_v30 = vmax.f32 %v679_v25, %v680_v28  ;;  %v692_v32 = vmax.f32 %v690_v26, %v691_v29 }
 0x51a   : > { %v682_v34 = vsub.f32 %v671_v11, %v681_v30  ;;  %v693_v37 = vsub.f32 %v671_v11, %v692_v32 }
 0x51c   : > { %v683_v38 = vmul.f32 1.442695, %v682_v34  ;;  %v694_v41 = vmul.f32 1.442695, %v693_v37 }
 0x51e   : > { %1301 = vpow2.f32 %v683_v38 }
 0x51f   : > { %1303 = vpow2.f32 %v694_v41 }
 0x528   : > { %v1302_v43 = vpop.eup %1301 }
 0x529   : > { %v1304_v44 = vpop.eup %1303  ;;  %v696_v45 = vsel %vm2083_vm6, %v1302_v43, 0.0 }
 0x52a   : > { %v697_v48 = vrot.slane %v696_v45, 4  ;;  %v706_v49 = vrot.slane %v1304_v44, 4 }
 0x52c   : > { %v698_v53 = vadd.f32 %v697_v48, %v696_v45  ;;  %v708_v6 = vsel %vm2084_vm2, %v706_v49, 0.0 }
 0x52d   : > { %v709_v56 = vrot.slane %v708_v6, 4 }
 0x52e   : > { %v699_v57 = vrot.slane %v698_v53, 2 }
 0x52f   : > { %v710_v58 = vadd.f32 %v709_v56, %v708_v6 }
 0x530   : > { %v700_v60 = vadd.f32 %v699_v57, %v698_v53 }
 0x531   : > { %v711_v61 = vrot.slane %v710_v58, 2 }
 0x532   : > { %v701_v62 = vrot.slane %v700_v60, 1 }
 0x533   : > { %v712_v63 = vadd.f32 %v711_v61, %v710_v58 }
 0x534   : > { %v702_v0 = vadd.f32 %v701_v62, %v700_v60 }
 0x535   : > { %v713_v3 = vrot.slane %v712_v63, 1 }
 0x536   : > { %1305 = vrcp.f32 %v702_v0 }
 0x537   : > { %v714_v5 = vadd.f32 %v713_v3, %v712_v63 }
 0x539   : > { %1307 = vrcp.f32 %v714_v5 }
 0x540   : > { %v1306_v7 = vpop.eup %1305 }
 0x541   : > { %v704_v2 = vmul.f32 %v1306_v7, %v1302_v43 }
 0x543   : > { %v1308_v8 = vpop.eup %1307 }
 0x544   : > { %v716_v9 = vmul.f32 %v1308_v8, %v1304_v44 }
 0x546   : > { %v717_v10 = vsel %vm2085_vm11, %v704_v2, %v716_v9 }
 0x547   : > { %1169 = vmatmul.mubr.msk.f32.vlgmr.msra.gmra.mrb[2].mxu0 %vm2086_vm4, %v717_v10 }
 0x548   : > { %1173 = vmatprep.mubr.msk.f32.mxu0 %vm2087_vm3, %v1447_v4 }
 0x61a   : > { %v787_v24 = vpop.f32.mrb[2].mxu0 }
 0x61b   : > { %v794_v27 = vmul.f32 %v792_v18, %v787_v24  ;;  %v798_v31 = vmul.f32 %v796_v20, %v787_v24  ;;  %v1170_v33 = vpop.f32.mrb[3].mxu0 }
 0x61d   : > { %v800_v36 = vrot.slane %v798_v31, 4 }
 0x61f   : > { %v802_v39 = vadd.f32 %v800_v36, %v794_v27 }
 0x621   : > { %1172 = vmatpush3.msk.msra.mxu0 %vm2088_vm7, %v802_v39 }
 0x622   : > { %1174 = vmatmul.mubr.msk.f32.vlgmr.msra.gmra.mrb[4].mxu0 %vm803_vm8, %v1450_v35 }
 0x6f5   : > { %v876_v40 = vpop.f32.mrb[4].mxu0 }
 0x6f6   : > { %v1037_v42 = vmul.f32 -1.442695, %v876_v40  ;;  %v1175_v1 = vpop.f32.mrb[5].mxu0 }
 0x6f8   : > { %1309 = vpow2.f32 %v1037_v42 }
 0x702   : > { %v1310_v4 = vpop.eup %1309 }
 0x703   : > { %v883_v46 = vadd.f32 1.0, %v1310_v4 }
 0x705   : > { %1311 = vrcp.f32 %v883_v46 }
 0x70f   : > { %v1312_v47 = vpop.eup %1311 }
 0x710   : > { %v889_v50 = vrot.slane %v1312_v47, %v1856_v59 }
 0x712   : > { %v890_v51 = vmul.f32 %v889_v50, %v1792_v52 }
 0x714   : > { %891 = vst [vmem:[%s198_s8] sm:$0xf] %v890_v51 }
 0x715   : > { %1384 = shalt.err (!%p1381_p10)
}
 0x716   : > { %s1385_s29 = scalar_lea.hbm %s1944_s24, 64  ;;  %s1389_s20 = scalar_lea.hbm %s1991_s3, 128 }
 0x717   : > { %p1386_p1 = scmp.ne.s32.totalorder %s1944_s24, %s1385_s29  ;;  %p1390_p3 = scmp.lt.u32.totalorder %s1944_s24, %s1991_s3 }
 0x718   : > { %p1391_p11 = scmp.lt.u32.totalorder %s1389_s20, %s1385_s29  ;;  %p1393_p6 = scmp.lt.u32.totalorder %s1385_s29, %s1944_s24 }
 0x719   : > { %p1387_p2 = pnand %p1386_p1, %p1569_p8 }
 0x71a   : > { %p1392_p4 = por %p1391_p11, %p1390_p3 }
 0x71b   : > { %p1388_p7 = pneg %p1387_p2 }
 0x71c   : > { %p1394_p9 = por %p1393_p6, %p1392_p4 }
 0x71e   : > { %p1395_p12 = pnand %p1394_p9, %p1388_p7 }
 0x720   : > { %1398 = shalt.err (!%p1395_p12)
}
 0x721   : > { %1230 = dma.vmem_to_hbm [thread:$0]  (%p1569_p8), %s1946_s9, 64, %s1944_s24, %s893_s25  }
 0x722 PF: > { %s918_s30 = sand.u32 1, %s1429_s12   ;;  %p2089_p13 = scmp.ne.s32.totalorder %s2015_s19, 0 }
 0x723   : > { %p2090_p0 = scmp.ge.s32.totalorder %s1441_s15, 2  ;;  %s919_s4 = scalar_lea.sflag [#allocation4], %s918_s30 }
 0x725   : > { %p1241_p5 = pnand %p2090_p0, %p2089_p13 }
 0x727   : > { %1424 = dma.done.wait (!%p1241_p5), %s919_s4, 64  }
 0x728   : > { %1426 = vsyncadd (!%p1241_p5), %s919_s4, 4294967232  ;;  %p17_p10 = scmp.ge.s32.totalorder %s1525_s23, 4   ;;  %s2091_s12 = smov %s1433_s13 }
 0x729   : > { %s2092_s13 = smov %s1437_s14  ;;  %s2093_s14 = smov %s1561_s11 }
 0x72a   : > { %s2094_s15 = smov %s1525_s23  ;;  %19 = sbr.rel (!%p17_p10) target bundleno = 6 (0x6), region = 81 }
 0x731   :  { %924 = vsyncpa [#allocation3], 1 }
 0x732   :  { %926 = vsyncpa [#allocation3 + $0x1], 1 }
 0x733   :  { %927 = vsyncpa [#allocation6], 1 }
 0x734   :  { %928 = vsyncpa [#allocation4], 1 }
 0x735   :  { %930 = vsyncpa [#allocation4 + $0x1], 1 }

</bundles_post_ra>
